<compile_context>
chip_gen: v7x
topology: tpu7x:2x2x1
jax: 0.10.0
libtpu: 0.0.40
codegen_flags: <defaults>
</compile_context>

<pallas_src>
import jax
import jax.numpy as jnp
from jax.experimental import pallas as pl
from jax.experimental.pallas import tpu as pltpu

_LANE = 128


def _round_up(n, m):
    return ((n + m - 1) // m) * m


def _linear_relu_t_kernel(x_ref, w_ref, b_ref, o_ref):
    # x_ref: (Din, TB) batch-on-lanes tile, w_ref: (Dout, Din), b_ref: (Dout, 1)
    # o_ref: (Dout, TB) lane-dense output tile.
    y = jnp.dot(w_ref[...], x_ref[...], preferred_element_type=jnp.float32)
    y = y + b_ref[...]                      # (Dout, 1) broadcast over lanes
    o_ref[...] = jnp.maximum(y, 0.0).astype(o_ref.dtype)


def ae_part2_forward(x, w, b, *, block_b=32768, use_bf16=None):
    """relu(x @ W.T + b).

    Args:
      x: (B, 10) activations.
      w: (5, 10) weight in PyTorch nn.Linear layout (out_features, in_features).
      b: (5,) bias.
      block_b: batch-tile width on the lane axis (rounded to a multiple of 128
        and clamped against a conservative cross-generation VMEM budget).
      use_bf16: None -> auto-enable bf16 streaming for B >= 4096 (f32 accum
        kept; expect ~1e-2 rel error); True/False to force.

    Returns:
      (B, 5) activations in x's dtype.
    """
    B, d_in = x.shape
    d_out, d_in_w = w.shape
    assert d_in == d_in_w, (d_in, d_in_w)
    out_dtype = x.dtype

    if use_bf16 is None:
        use_bf16 = B >= 4096

    # Lane-dense layout: batch on the 128-lane axis.
    x_t = jnp.transpose(x)                      # (Din, B)
    if use_bf16:
        x_t = x_t.astype(jnp.bfloat16)
        w_k = w.astype(jnp.bfloat16)
    else:
        w_k = w
    x_bytes = jnp.dtype(x_t.dtype).itemsize
    out_bytes = jnp.dtype(out_dtype).itemsize

    # --- tile sizing -------------------------------------------------------
    padded_b = _round_up(B, _LANE)
    tb = max(_LANE, min(_round_up(block_b, _LANE), padded_b))

    # Conservative VMEM clamp: double-buffered x + out tiles must fit well
    # under the smallest scoped-VMEM default (16 MiB on v5e).
    vmem_budget = 12 * 1024 * 1024
    bytes_per_lane = d_in * x_bytes + d_out * out_bytes
    max_tb = max(_LANE, (vmem_budget // (2 * bytes_per_lane)) // _LANE * _LANE)
    tb = min(tb, max_tb)

    # v7x megacore: for large batches make sure the grid has >= 2 steps so the
    # "parallel" axis can shard across both TensorCores.
    if padded_b == tb and B >= 4096:
        tb = _round_up(pl.cdiv(padded_b, 2), _LANE)

    padded_b = _round_up(padded_b, tb)
    # -----------------------------------------------------------------------

    if padded_b != B:
        # Zero-padded columns produce relu(b); they are sliced off below.
        x_t = jnp.pad(x_t, ((0, 0), (0, padded_b - B)))

    b2 = b.reshape(d_out, 1).astype(jnp.float32)

    cost = pl.CostEstimate(
        flops=2 * padded_b * d_in * d_out,
        transcendentals=0,
        bytes_accessed=(x_t.size * x_bytes
                        + w_k.size * jnp.dtype(w_k.dtype).itemsize
                        + b2.size * 4
                        + padded_b * d_out * out_bytes),
    )

    out_t = pl.pallas_call(
        _linear_relu_t_kernel,
        out_shape=jax.ShapeDtypeStruct((d_out, padded_b), out_dtype),
        grid_spec=pltpu.PrefetchScalarGridSpec(
            num_scalar_prefetch=0,
            grid=(padded_b // tb,),
            in_specs=[
                # x streamed per batch tile, batch on the lane axis.
                pl.BlockSpec((d_in, tb), lambda i: (0, i)),
                # Weight and bias: constant index_map -> fetched once,
                # VMEM-resident across all grid steps.
                pl.BlockSpec((d_out, d_in), lambda i: (0, 0)),
                pl.BlockSpec((d_out, 1), lambda i: (0, 0)),
            ],
            out_specs=pl.BlockSpec((d_out, tb), lambda i: (0, i)),
        ),
        compiler_params=pltpu.CompilerParams(
            dimension_semantics=("parallel",),   # megacore sharding on v7x
        ),
        cost_estimate=cost,
    )(x_t, w_k, b2)

    return jnp.transpose(out_t[:, :B])           # (B, Dout)


if __name__ == "__main__":
    key = jax.random.PRNGKey(0)
    kx, kw, kb, kx2, kx3 = jax.random.split(key, 5)

    D_IN, D_OUT = 10, 5

    # Deterministic synthetic parameters in PyTorch nn.Linear(10, 5) layout.
    w = jax.random.uniform(kw, (D_OUT, D_IN), jnp.float32, -0.3, 0.3)  # (out, in)
    b = jax.random.uniform(kb, (D_OUT,), jnp.float32, -0.3, 0.3)

    def ref(xx):
        return jnp.maximum(xx @ w.T + b[None, :], 0.0)

    # Case 1: small batch, single lane tile (exercises lane padding).
    B1 = 8
    x1 = jax.random.normal(kx, (B1, D_IN), jnp.float32)
    out1 = jax.block_until_ready(ae_part2_forward(x1, w, b))
    assert out1.shape == (B1, D_OUT)
    assert jnp.allclose(out1, ref(x1), atol=1e-5, rtol=1e-5)

    # Case 2: batch not a multiple of the tile -> multi-step grid + padding.
    B2 = 300
    x2 = jax.random.normal(kx2, (B2, D_IN), jnp.float32)
    out2 = jax.block_until_ready(ae_part2_forward(x2, w, b, block_b=128))
    assert out2.shape == (B2, D_OUT)
    assert jnp.allclose(out2, ref(x2), atol=1e-5, rtol=1e-5)

    # Case 3: explicit bf16 streaming path (f32 accumulation), looser tolerance.
    B3 = 64
    x3 = jax.random.normal(kx3, (B3, D_IN), jnp.float32)
    out3 = jax.block_until_ready(ae_part2_forward(x3, w, b, use_bf16=True))
    assert out3.shape == (B3, D_OUT)
    assert jnp.allclose(out3, ref(x3), atol=3e-2, rtol=3e-2)

    print("KERNEL_OK")
</pallas_src>

<mosaic_0001>
module attributes {stable_mosaic.version = 11 : i64} {
  func.func @_linear_relu_t_kernel(%arg0: i32, %arg1: memref<10x128xf32, #tpu.memory_space<vmem>>, %arg2: memref<5x10xf32, #tpu.memory_space<vmem>>, %arg3: memref<5x1xf32, #tpu.memory_space<vmem>>, %arg4: memref<5x128xf32, #tpu.memory_space<vmem>>) attributes {dimension_semantics = [#tpu.dimension_semantics<parallel>], iteration_bounds = array<i64: 1>, scalar_prefetch = 0 : i64, scratch_operands = 0 : i64, tpu.core_type = #tpu.core_type<tc>, window_params = [{transform_indices = @transform_0, window_bounds = array<i64: 10, 128>}, {pipeline_mode = #tpu.pipeline_mode<synchronous>, transform_indices = @transform_1, window_bounds = array<i64: 5, 10>}, {pipeline_mode = #tpu.pipeline_mode<synchronous>, transform_indices = @transform_2, window_bounds = array<i64: 5, 1>}, {transform_indices = @transform_3, window_bounds = array<i64: 5, 128>}]} {
    %c0 = arith.constant 0 : index
    %c0_0 = arith.constant 0 : index
    %0 = vector.load %arg2[%c0, %c0_0] : memref<5x10xf32, #tpu.memory_space<vmem>>, vector<5x10xf32>
    %c0_1 = arith.constant 0 : index
    %c0_2 = arith.constant 0 : index
    %1 = vector.load %arg1[%c0_1, %c0_2] : memref<10x128xf32, #tpu.memory_space<vmem>>, vector<10x128xf32>
    %cst = arith.constant dense<0.000000e+00> : vector<5x128xf32>
    %2 = tpu.matmul %0, %1, %cst {dimension_numbers = #tpu.dot_dimension_numbers<[1], [0], [0], [1], [0, 0, 1, 1], [], []>} : vector<5x10xf32>, vector<10x128xf32>, vector<5x128xf32> -> vector<5x128xf32>
    %c0_3 = arith.constant 0 : index
    %c0_4 = arith.constant 0 : index
    %3 = vector.load %arg3[%c0_3, %c0_4] : memref<5x1xf32, #tpu.memory_space<vmem>>, vector<5x1xf32>
    %4 = vector.broadcast %3 : vector<5x1xf32> to vector<5x128xf32>
    %5 = arith.addf %2, %4 : vector<5x128xf32>
    %cst_5 = arith.constant 0.000000e+00 : f32
    %6 = vector.broadcast %cst_5 : f32 to vector<5x128xf32>
    %7 = arith.maximumf %5, %6 : vector<5x128xf32>
    %c0_6 = arith.constant 0 : index
    %c0_7 = arith.constant 0 : index
    %8 = vector.load %arg4[%c0_6, %c0_7] : memref<5x128xf32, #tpu.memory_space<vmem>>, vector<5x128xf32>
    tpu.vector_store %arg4[%c0_6, %c0_7], %7 {strides = array<i32>} : memref<5x128xf32, #tpu.memory_space<vmem>>, vector<5x128xf32>,
    return
  }
  func.func @transform_0(%arg0: i32) -> (i32, i32) {
    %c0_i32 = arith.constant 0 : i32
    %c0_i32_0 = arith.constant 0 : i32
    return %c0_i32, %arg0 : i32, i32
  }
  func.func @transform_1(%arg0: i32) -> (i32, i32) {
    %c0_i32 = arith.constant 0 : i32
    %c0_i32_0 = arith.constant 0 : i32
    %c0_i32_1 = arith.constant 0 : i32
    return %c0_i32, %c0_i32_0 : i32, i32
  }
  func.func @transform_2(%arg0: i32) -> (i32, i32) {
    %c0_i32 = arith.constant 0 : i32
    %c0_i32_0 = arith.constant 0 : i32
    %c0_i32_1 = arith.constant 0 : i32
    return %c0_i32, %c0_i32_0 : i32, i32
  }
  func.func @transform_3(%arg0: i32) -> (i32, i32) {
    %c0_i32 = arith.constant 0 : i32
    %c0_i32_0 = arith.constant 0 : i32
    return %c0_i32, %arg0 : i32, i32
  }
}

</mosaic_0001>

<bundles_post_ra>
// kernel: tpu_custom_call.1
= control target key start
LH: loop header
LB: loop body
LE: loop exit
PB: predicated region body
PF: predicated region fallthrough
CT: control target
= control target key end

     0   :  { %8 = vsyncpa [#allocation3], 0  ;;  %s266_s0 = inlined_call_operand.hbm [shape: f32[10,128], index: 0, kind: input, shape index: {}]   ;;  %s267_s1 = inlined_call_operand.vmem [shape: f32[5,10], index: 1, kind: input, shape index: {}]   ;;  %s268_s2 = inlined_call_operand.vmem [shape: f32[5,1], index: 2, kind: input, shape index: {}]   ;;  %s269_s3 = inlined_call_operand.hbm [shape: f32[5,128], index: 3, kind: output, shape index: {}]  }
   0x1   :  { %9 = vsyncpa [#allocation4], 0  ;;  %s207_s12 = smov [#allocation2]   ;;  %s159_s16 = scalar_lea.hbm %s266_s0, 256 }
   0x2   :  { %s15_s13 = sshll.u32 %s207_s12, 4  ;;  %p160_p0 = scmp.ne.s32.totalorder %s266_s0, %s159_s16  ;;  %s16_s13 = int_to_ptr.vmem [resolvable:$true] %s15_s13 }
   0x3   :  { %p163_p1 = scmp.lt.u32.totalorder %s159_s16, %s266_s0 }
   0x5   :  { %p165_p2 = pnand %p163_p1, %p160_p0 }
   0x7   :  { %168 = shalt.err (!%p165_p2)
}
   0x8   :  { %s169_s21 = scalar_lea.vmem %s16_s13, 256  ;;  %p174_p4 = scmp.lt.s32.totalorder %s16_s13, %s16_s13 }
   0x9   :  { %p170_p3 = scmp.ne.s32.totalorder %s16_s13, %s169_s21  ;;  %p175_p5 = scmp.lt.s32.totalorder %s169_s21, %s169_s21 }
   0xb   :  { %p176_p6 = por %p175_p5, %p174_p4 }
   0xd   :  { %p177_p7 = pnand %p176_p6, %p170_p3 }
   0xf   :  { %180 = shalt.err (!%p177_p7)
}
  0x10   :  { %s208_s22 = smov 128   ;;  %s209_s23 = smov 8  }
  0x11   :  { %21 = dma.hbm_to_vmem [thread:$0]  %s266_s0, 256, %s16_s13, [#allocation3], %s208_s22, %s208_s22, %s209_s23  }
  0x12   :  { %203 = dma.done.wait [#allocation3], 256  }
  0x13   :  { %204 = vsyncadd [#allocation3], 4294967040  ;;  %v210_v0 = vmov 0.0|0.0   ;;  %vm211_vm0 = vmmov 0   ;;  %v212_v1 = vmov 0.0   ;;  %v213_v2 = vmov 0  }
  0x14   :  { %145 = vmatprep.subr.bf16.mxu0 %v210_v0  ;;  %142 = vmatprep.mubr.msk.f32.mxu0 %vm211_vm0, %v212_v1  ;;  %vm42_vm1 = vcmask 1041408   ;;  %v30_v3 = vld [vmem:[#allocation2] sm:$0xff]  ;;  %v31_v4 = vld [vmem:[#allocation2 + $0x8] sm:$0x3]  ;;  %vm214_vm2 = vmmov 1   ;;  %vm38_vm4 = vcmask 80896  }
  0x15   :  { %158 = vset.pattern.permute.xlu0 %v213_v2  ;;  %vm147_vm3 = vmpackc.low %vm42_vm1, %vm214_vm2  ;;  %v146_v5 = vpack.c.bf16 %v31_v4, %v30_v3  ;;  %v32_v6 = vld [vmem:[%s268_s2] sm:$0x1f]  ;;  %s215_s29 = smov [#allocation5]  }
  0x16   :  { %35 = vperm.xlu0 %158, %v32_v6   ;;  %v29_v7 = vld [vmem:[%s267_s1] sm:$0x1f]  ;;  %s124_s30 = sshll.u32 %s215_s29, 4  ;;  %s125_s30 = int_to_ptr.vmem [resolvable:$true] %s124_s30 }
  0x17   :  { %148 = vmatpush3.bf16.msk.msra.mxu0 %vm147_vm3, %v146_v5  ;;  %s181_s4 = scalar_lea.vmem %s125_s30, 128  ;;  %p186_p9 = scmp.lt.s32.totalorder %s125_s30, %s125_s30 }
  0x18   :  { %p182_p8 = scmp.ne.s32.totalorder %s125_s30, %s181_s4  ;;  %p187_p10 = scmp.lt.s32.totalorder %s181_s4, %s181_s4 }
  0x1a   :  { %143 = vmatmul.mubr.msk.f32.vlgmr.msra.gmra.mrb[0].mxu0 %vm38_vm4, %v29_v7  ;;  %p188_p11 = por %p187_p10, %p186_p9 }
  0x1c   :  { %p189_p12 = pnand %p188_p11, %p182_p8 }
  0x95   :  { %v36_v8 = vpop.permute.xlu0 %35 }
  0xed   :  { %v112_v9 = vpop.f32.mrb[0].mxu0 }
  0xee   :  { %v113_v10 = vadd.f32 %v112_v9, %v36_v8  ;;  %v144_v11 = vpop.f32.mrb[1].mxu0 }
  0xf0   :  { %v116_v12 = vmax.f32 %v113_v10, 0.0 }
  0xf2   :  { %117 = vst [vmem:[#allocation5] sm:$0x1f] %v116_v12 }
  0xf3   :  { %192 = shalt.err (!%p189_p12)
}
  0xf4   :  { %s193_s5 = scalar_lea.hbm %s269_s3, 128 }
  0xf5   :  { %p194_p13 = scmp.ne.s32.totalorder %s269_s3, %s193_s5  ;;  %p197_p0 = scmp.lt.u32.totalorder %s193_s5, %s269_s3 }
  0xf7   :  { %p199_p1 = pnand %p197_p0, %p194_p13 }
  0xf9   :  { %202 = shalt.err (!%p199_p1)
}
  0xfa   :  { %127 = dma.vmem_to_hbm [thread:$0]  %s125_s30, 128, %s269_s3, [#allocation4]  }
  0xfb   :  { %205 = dma.done.wait [#allocation4], 128  }
  0xfc   :  { %206 = vsyncadd [#allocation4], 4294967168 }
  0xfd   :  { %131 = vsyncpa [#allocation3], 1 }
  0xfe   :  { %132 = vsyncpa [#allocation4], 1 }

</bundles_post_ra>
